<compile_context>
chip_gen: v6e
topology: v6e:2x2x1
jax: 0.10.0
libtpu: 0.0.40
codegen_flags: <defaults>
</compile_context>

<pallas_src>
import jax
import jax.numpy as jnp
from jax.experimental import pallas as pl
from jax.experimental.pallas import tpu as pltpu

NEG_SLOPE = 0.01  # torch.nn.LeakyReLU default


def _leaky_relu(v):
    # max(v, 0.01*v) == LeakyReLU(v) for slope < 1; cheaper than where().
    return jnp.maximum(v, NEG_SLOPE * v)


def _round_up(n, m):
    return ((n + m - 1) // m) * m


def clip_adapter_kernel(x_ref, w1_ref, w2_ref, h_ref, y_ref):
    # x: (TB, c_in_p), w1: (c_in_p, bn_p), w2: (bn_p, c_in_p)
    x = x_ref[...]
    h = _leaky_relu(jnp.dot(x, w1_ref[...], preferred_element_type=jnp.float32))
    h_ref[...] = h.astype(h_ref.dtype)
    y = _leaky_relu(jnp.dot(h.astype(w2_ref.dtype), w2_ref[...],
                            preferred_element_type=jnp.float32))
    y_ref[...] = y.astype(y_ref.dtype)


def clip_adapter(x, w1_t, w2_t):
    """x: (B, 1, c_in) or (B, c_in). w1_t: (c_in, bottleneck), w2_t: (bottleneck, c_in).

    Returns (h, y) with h: (B, bottleneck), y: (B, c_in) — matching the
    PyTorch module's (x, y) return after x.squeeze(1).
    """
    if x.ndim == 3 and x.shape[1] == 1:
        x = jnp.squeeze(x, axis=1)  # squeeze(1) — glue, stays in JAX
    B, c_in = x.shape
    bottleneck = w1_t.shape[1]
    dtype = x.dtype
    itemsize = jnp.dtype(dtype).itemsize

    # Pad feature dims to 128-lane multiples -> unmasked loads/stores and
    # fully used MXU columns.  Zero padding is exact (LeakyReLU(0)=0).
    c_in_p = _round_up(c_in, 128)
    bn_p = _round_up(bottleneck, 128)

    # Batch tile: largest candidate whose double-buffered activation tiles
    # plus resident (double-buffered) weights fit a ~24 MiB budget — safe for
    # v7x's smaller per-core VMEM as well as v5e/v6e.
    weight_bytes = 2 * (c_in_p * bn_p + bn_p * c_in_p) * itemsize
    budget = 24 * 1024 * 1024
    TB = 8
    for cand in (1024, 512, 256, 128, 64, 32, 16, 8):
        act_bytes = 2 * cand * (2 * c_in_p + 2 * bn_p) * itemsize
        if weight_bytes + act_bytes <= budget:
            TB = cand
            break
    TB = min(TB, _round_up(B, 8))
    B_p = _round_up(B, TB)

    # Zero-pad to the kernel shapes.
    x_p = jnp.zeros((B_p, c_in_p), dtype).at[:B, :c_in].set(x)
    w1_p = jnp.zeros((c_in_p, bn_p), w1_t.dtype).at[:c_in, :bottleneck].set(w1_t)
    w2_p = jnp.zeros((bn_p, c_in_p), w2_t.dtype).at[:bottleneck, :c_in].set(w2_t)

    grid = (B_p // TB,)
    flops = 2 * B_p * (c_in_p * bn_p + bn_p * c_in_p)
    bytes_accessed = itemsize * (B_p * (2 * c_in_p + bn_p)
                                 + c_in_p * bn_p + bn_p * c_in_p)
    vmem_limit = int(min(
        weight_bytes + 2 * TB * (2 * c_in_p + 2 * bn_p) * itemsize + (2 << 20),
        64 * 1024 * 1024))

    h_p, y_p = pl.pallas_call(
        clip_adapter_kernel,
        out_shape=(
            jax.ShapeDtypeStruct((B_p, bn_p), dtype),
            jax.ShapeDtypeStruct((B_p, c_in_p), dtype),
        ),
        grid_spec=pltpu.PrefetchScalarGridSpec(
            num_scalar_prefetch=0,
            grid=grid,
            in_specs=[
                pl.BlockSpec((TB, c_in_p), lambda i: (i, 0)),     # x tile
                pl.BlockSpec((c_in_p, bn_p), lambda i: (0, 0)),   # w1 resident
                pl.BlockSpec((bn_p, c_in_p), lambda i: (0, 0)),   # w2 resident
            ],
            out_specs=[
                pl.BlockSpec((TB, bn_p), lambda i: (i, 0)),       # h tile
                pl.BlockSpec((TB, c_in_p), lambda i: (i, 0)),     # y tile
            ],
        ),
        compiler_params=pltpu.CompilerParams(
            dimension_semantics=("parallel",),   # 2x on v7x (2 TCs), no-op v5e/v6e
            vmem_limit_bytes=vmem_limit,
        ),
        cost_estimate=pl.CostEstimate(
            flops=flops, transcendentals=0, bytes_accessed=bytes_accessed),
    )(x_p, w1_p, w2_p)

    # Slice padding back off (exact: zero rows/cols stay zero through both
    # matmuls and LeakyReLU).
    return h_p[:B, :bottleneck], y_p[:B, :c_in]


def reference(x, w1_t, w2_t):
    if x.ndim == 3 and x.shape[1] == 1:
        x = jnp.squeeze(x, axis=1)
    h = jnp.where(x @ w1_t >= 0, x @ w1_t, NEG_SLOPE * (x @ w1_t))
    y = jnp.where(h @ w2_t >= 0, h @ w2_t, NEG_SLOPE * (h @ w2_t))
    return h, y


if __name__ == "__main__":
    B, c_in, bottleneck = 8, 32, 226  # bottleneck matches module default

    key = jax.random.PRNGKey(0)
    kx, k1, k2 = jax.random.split(key, 3)

    # Deterministic synthetic parameters; PyTorch Linear stores (out, in),
    # we build those shapes then transpose for the kernel.
    x = jax.random.normal(kx, (B, 1, c_in), dtype=jnp.float32)
    w1 = jax.random.normal(k1, (bottleneck, c_in), dtype=jnp.float32) * (1.0 / jnp.sqrt(c_in))
    w2 = jax.random.normal(k2, (c_in, bottleneck), dtype=jnp.float32) * (1.0 / jnp.sqrt(bottleneck))
    w1_t = w1.T  # (c_in, bottleneck)
    w2_t = w2.T  # (bottleneck, c_in)

    h, y = clip_adapter(x, w1_t, w2_t)
    jax.block_until_ready((h, y))

    h_ref, y_ref = reference(x, w1_t, w2_t)
    assert h.shape == (B, bottleneck) and y.shape == (B, c_in)
    assert jnp.allclose(h, h_ref, atol=1e-5, rtol=1e-5)
    assert jnp.allclose(y, y_ref, atol=1e-5, rtol=1e-5)

    print("KERNEL_OK")
</pallas_src>

<mosaic_0001>
module attributes {stable_mosaic.version = 11 : i64} {
  func.func @clip_adapter_kernel(%arg0: i32, %arg1: memref<8x128xf32, #tpu.memory_space<vmem>>, %arg2: memref<128x256xf32, #tpu.memory_space<vmem>>, %arg3: memref<256x128xf32, #tpu.memory_space<vmem>>, %arg4: memref<8x256xf32, #tpu.memory_space<vmem>>, %arg5: memref<8x128xf32, #tpu.memory_space<vmem>>) attributes {dimension_semantics = [#tpu.dimension_semantics<parallel>], iteration_bounds = array<i64: 1>, scalar_prefetch = 0 : i64, scratch_operands = 0 : i64, tpu.core_type = #tpu.core_type<tc>, window_params = [{transform_indices = @transform_0, window_bounds = array<i64: 8, 128>}, {pipeline_mode = #tpu.pipeline_mode<synchronous>, transform_indices = @transform_1, window_bounds = array<i64: 128, 256>}, {pipeline_mode = #tpu.pipeline_mode<synchronous>, transform_indices = @transform_2, window_bounds = array<i64: 256, 128>}, {transform_indices = @transform_3, window_bounds = array<i64: 8, 256>}, {transform_indices = @transform_4, window_bounds = array<i64: 8, 128>}]} {
    %c0 = arith.constant 0 : index
    %c0_0 = arith.constant 0 : index
    %0 = vector.load %arg1[%c0, %c0_0] : memref<8x128xf32, #tpu.memory_space<vmem>>, vector<8x128xf32>
    %c0_1 = arith.constant 0 : index
    %c0_2 = arith.constant 0 : index
    %1 = vector.load %arg2[%c0_1, %c0_2] : memref<128x256xf32, #tpu.memory_space<vmem>>, vector<128x256xf32>
    %cst = arith.constant dense<0.000000e+00> : vector<8x256xf32>
    %2 = tpu.matmul %0, %1, %cst {dimension_numbers = #tpu.dot_dimension_numbers<[1], [0], [0], [1], [0, 0, 1, 1], [], []>} : vector<8x128xf32>, vector<128x256xf32>, vector<8x256xf32> -> vector<8x256xf32>
    %cst_3 = arith.constant 0.00999999977 : f32
    %3 = vector.broadcast %cst_3 : f32 to vector<8x256xf32>
    %4 = arith.mulf %3, %2 : vector<8x256xf32>
    %5 = arith.maximumf %2, %4 : vector<8x256xf32>
    %c0_4 = arith.constant 0 : index
    %c0_5 = arith.constant 0 : index
    %6 = vector.load %arg4[%c0_4, %c0_5] : memref<8x256xf32, #tpu.memory_space<vmem>>, vector<8x256xf32>
    tpu.vector_store %arg4[%c0_4, %c0_5], %5 {strides = array<i32>} : memref<8x256xf32, #tpu.memory_space<vmem>>, vector<8x256xf32>,
    %c0_6 = arith.constant 0 : index
    %c0_7 = arith.constant 0 : index
    %7 = vector.load %arg3[%c0_6, %c0_7] : memref<256x128xf32, #tpu.memory_space<vmem>>, vector<256x128xf32>
    %cst_8 = arith.constant dense<0.000000e+00> : vector<8x128xf32>
    %8 = tpu.matmul %5, %7, %cst_8 {dimension_numbers = #tpu.dot_dimension_numbers<[1], [0], [0], [1], [0, 0, 1, 1], [], []>} : vector<8x256xf32>, vector<256x128xf32>, vector<8x128xf32> -> vector<8x128xf32>
    %cst_9 = arith.constant 0.00999999977 : f32
    %9 = vector.broadcast %cst_9 : f32 to vector<8x128xf32>
    %10 = arith.mulf %9, %8 : vector<8x128xf32>
    %11 = arith.maximumf %8, %10 : vector<8x128xf32>
    %c0_10 = arith.constant 0 : index
    %c0_11 = arith.constant 0 : index
    %12 = vector.load %arg5[%c0_10, %c0_11] : memref<8x128xf32, #tpu.memory_space<vmem>>, vector<8x128xf32>
    tpu.vector_store %arg5[%c0_10, %c0_11], %11 {strides = array<i32>} : memref<8x128xf32, #tpu.memory_space<vmem>>, vector<8x128xf32>,
    return
  }
  func.func @transform_0(%arg0: i32) -> (i32, i32) {
    %c0_i32 = arith.constant 0 : i32
    %c0_i32_0 = arith.constant 0 : i32
    return %arg0, %c0_i32 : i32, i32
  }
  func.func @transform_1(%arg0: i32) -> (i32, i32) {
    %c0_i32 = arith.constant 0 : i32
    %c0_i32_0 = arith.constant 0 : i32
    %c0_i32_1 = arith.constant 0 : i32
    return %c0_i32, %c0_i32_0 : i32, i32
  }
  func.func @transform_2(%arg0: i32) -> (i32, i32) {
    %c0_i32 = arith.constant 0 : i32
    %c0_i32_0 = arith.constant 0 : i32
    %c0_i32_1 = arith.constant 0 : i32
    return %c0_i32, %c0_i32_0 : i32, i32
  }
  func.func @transform_3(%arg0: i32) -> (i32, i32) {
    %c0_i32 = arith.constant 0 : i32
    %c0_i32_0 = arith.constant 0 : i32
    return %arg0, %c0_i32 : i32, i32
  }
  func.func @transform_4(%arg0: i32) -> (i32, i32) {
    %c0_i32 = arith.constant 0 : i32
    %c0_i32_0 = arith.constant 0 : i32
    return %arg0, %c0_i32 : i32, i32
  }
}

</mosaic_0001>

<bundles_post_ra>
// kernel: tpu_custom_call.1
= control target key start
LH: loop header
LB: loop body
LE: loop exit
PB: predicated region body
PF: predicated region fallthrough
CT: control target
= control target key end

     0   :  { %10 = vsyncpa [#allocation3], 0  ;;  %s505_s0 = inlined_call_operand.hbm [shape: f32[8,128], index: 0, kind: input, shape index: {}]   ;;  %s506_s1 = inlined_call_operand.hbm [shape: f32[128,256], index: 1, kind: input, shape index: {}]   ;;  %s507_s2 = inlined_call_operand.hbm [shape: f32[256,128], index: 2, kind: input, shape index: {}]   ;;  %s508_s3 = inlined_call_operand.hbm [shape: f32[8,256], index: 3, kind: output, shape index: {0}]   ;;  %s509_s4 = inlined_call_operand.hbm [shape: f32[8,128], index: 4, kind: output, shape index: {1}]  }
   0x1   :  { %11 = vsyncpa [#allocation6], 0 }
   0x2   :  { %12 = vsyncpa [#allocation4], 0 }
   0x3   :  { %13 = vsyncpa [#allocation10], 0  ;;  %s455_s15 = smov [#allocation5]  }
   0x4   :  { %s29_s16 = sshll.u32 %s455_s15, 4  ;;  %s30_s16 = int_to_ptr.vmem [resolvable:$true] %s29_s16 }
   0x5   :  { %s355_s17 = scalar_lea.vmem %s30_s16, 4096  ;;  %p360_p1 = scmp.lt.s32.totalorder %s30_s16, %s30_s16 }
   0x6   :  { %p356_p0 = scmp.ne.s32.totalorder %s30_s16, %s355_s17  ;;  %p361_p2 = scmp.lt.s32.totalorder %s355_s17, %s355_s17 }
   0x8   :  { %p362_p3 = por %p361_p2, %p360_p1 }
   0xa   :  { %p363_p4 = pnand %p362_p3, %p356_p0 }
   0xc   :  { %366 = shalt.err (!%p363_p4)
}
   0xd   :  { %s456_s18 = smov 256   ;;  %s457_s19 = smov 16  }
   0xe   :  { %35 = dma.hbm_to_vmem [thread:$0]  %s506_s1, 4096, %s30_s16, [#allocation6], %s456_s18, %s456_s18, %s457_s19  }
   0xf   :  { %s458_s22 = smov [#allocation2]   ;;  %s459_s24 = smov [#allocation7]  }
  0x10   :  { %s20_s23 = sshll.u32 %s458_s22, 4  ;;  %s41_s25 = sshll.u32 %s459_s24, 4  ;;  %s21_s23 = int_to_ptr.vmem [resolvable:$true] %s20_s23  ;;  %s42_s25 = int_to_ptr.vmem [resolvable:$true] %s41_s25 }
  0x11   :  { %s375_s26 = scalar_lea.vmem %s21_s23, 128  ;;  %p380_p6 = scmp.lt.s32.totalorder %s21_s23, %s21_s23 }
  0x12   :  { %p376_p5 = scmp.ne.s32.totalorder %s21_s23, %s375_s26  ;;  %p381_p7 = scmp.lt.s32.totalorder %s375_s26, %s375_s26 }
  0x14   :  { %p382_p8 = por %p381_p7, %p380_p6 }
  0x16   :  { %p383_p9 = pnand %p382_p8, %p376_p5 }
  0x18   :  { %386 = shalt.err (!%p383_p9)
}
  0x19   :  { %23 = dma.hbm_to_vmem [thread:$0]  %s505_s0, 128, %s21_s23, [#allocation3]  }
  0x1a   :  { %s395_s29 = scalar_lea.vmem %s42_s25, 4096  ;;  %p400_p11 = scmp.lt.s32.totalorder %s42_s25, %s42_s25 }
  0x1b   :  { %p396_p10 = scmp.ne.s32.totalorder %s42_s25, %s395_s29  ;;  %p401_p12 = scmp.lt.s32.totalorder %s395_s29, %s395_s29 }
  0x1d   :  { %p402_p13 = por %p401_p12, %p400_p11 }
  0x1f   :  { %p403_p0 = pnand %p402_p13, %p396_p10 }
  0x21   :  { %406 = shalt.err (!%p403_p0)
}
  0x22   :  { %s460_s1 = smov 128   ;;  %s461_s30 = smov 8  }
  0x23   :  { %47 = dma.hbm_to_vmem [thread:$0]  %s507_s2, 4096, %s42_s25, [#allocation6], %s460_s1, %s460_s1, %s461_s30  }
  0x24   :  { %447 = dma.done.wait [#allocation3], 128  }
  0x25   :  { %448 = vsyncadd [#allocation3], 4294967168 }
  0x26   :  { %449 = dma.done.wait [#allocation6], 8192  }
  0x27   :  { %450 = vsyncadd [#allocation6], 4294959104  ;;  %v462_v0 = vmov 0.0   ;;  %v89_v1 = vld [vmem:[#allocation5 + $0xf8] sm:$0xff]  ;;  %v88_v2 = vld [vmem:[#allocation5 + $0xf0] sm:$0xff]  ;;  %s463_s0 = smov [#allocation8]  }
  0x28   :  { %154 = vmatprep.mubr.f32.mxu0 %v462_v0  ;;  %v87_v3 = vld [vmem:[#allocation5 + $0xe8] sm:$0xff]  ;;  %90 = vmatprep.subr.mxu0 %v89_v1  ;;  %v86_v4 = vld [vmem:[#allocation5 + $0xe0] sm:$0xff]  ;;  %v85_v5 = vld [vmem:[#allocation5 + $0xd8] sm:$0xff]  ;;  %s278_s2 = sshll.u32 %s463_s0, 4  ;;  %s279_s2 = int_to_ptr.vmem [resolvable:$true] %s278_s2 }
  0x29   :  { %91 = vmatpush1.msra.mxu0 %v88_v2  ;;  %v84_v6 = vld [vmem:[#allocation5 + $0xd0] sm:$0xff]  ;;  %v83_v7 = vld [vmem:[#allocation5 + $0xc8] sm:$0xff]  ;;  %v82_v8 = vld [vmem:[#allocation5 + $0xc0] sm:$0xff]  ;;  %s407_s7 = scalar_lea.vmem %s279_s2, 256  ;;  %p412_p2 = scmp.lt.s32.totalorder %s279_s2, %s279_s2 }
  0x2a   :  { %92 = vmatprep.subr.mxu0 %v87_v3  ;;  %v81_v9 = vld [vmem:[#allocation5 + $0xb8] sm:$0xff]  ;;  %v80_v10 = vld [vmem:[#allocation5 + $0xb0] sm:$0xff]  ;;  %v79_v11 = vld [vmem:[#allocation5 + $0xa8] sm:$0xff]  ;;  %p408_p1 = scmp.ne.s32.totalorder %s279_s2, %s407_s7  ;;  %p413_p3 = scmp.lt.s32.totalorder %s407_s7, %s407_s7 }
  0x2b   :  { %93 = vmatpush1.msra.mxu0 %v86_v4  ;;  %v78_v12 = vld [vmem:[#allocation5 + $0xa0] sm:$0xff]  ;;  %v77_v13 = vld [vmem:[#allocation5 + $0x98] sm:$0xff]  ;;  %v76_v14 = vld [vmem:[#allocation5 + $0x90] sm:$0xff] }
  0x2c   :  { %94 = vmatprep.subr.mxu0 %v85_v5  ;;  %v198_v15 = vld [vmem:[#allocation7 + $0xf8] sm:$0xff]  ;;  %v197_v17 = vld [vmem:[#allocation7 + $0xf0] sm:$0xff]  ;;  %v75_v18 = vld [vmem:[#allocation5 + $0x88] sm:$0xff]  ;;  %p414_p4 = por %p413_p3, %p412_p2 }
  0x2d   :  { %95 = vmatpush1.msra.mxu0 %v84_v6  ;;  %v182_v16 = vld [vmem:[#allocation7 + $0x78] sm:$0xff]  ;;  %302 = vmatprep.subr.mxu1 %v198_v15  ;;  %v181_v19 = vld [vmem:[#allocation7 + $0x70] sm:$0xff]  ;;  %v74_v20 = vld [vmem:[#allocation5 + $0x80] sm:$0xff] }
  0x2e   :  { %96 = vmatprep.subr.mxu0 %v83_v7  ;;  %303 = vmatpush3.msra.mxu1 %v182_v16  ;;  %v196_v21 = vld [vmem:[#allocation7 + $0xe8] sm:$0xff]  ;;  %v73_v22 = vld [vmem:[#allocation5 + $0x78] sm:$0xff]  ;;  %v72_v24 = vld [vmem:[#allocation5 + $0x70] sm:$0xff]  ;;  %p415_p5 = pnand %p414_p4, %p408_p1 }
  0x2f   :  { %97 = vmatpush1.msra.mxu0 %v82_v8  ;;  %304 = vmatprep.subr.mxu1 %v197_v17  ;;  %v180_v23 = vld [vmem:[#allocation7 + $0x68] sm:$0xff]  ;;  %v195_v25 = vld [vmem:[#allocation7 + $0xe0] sm:$0xff]  ;;  %v194_v29 = vld [vmem:[#allocation7 + $0xd8] sm:$0xff] }
  0x30   :  { %98 = vmatprep.subr.mxu0 %v81_v9  ;;  %305 = vmatpush3.msra.mxu1 %v181_v19  ;;  %v71_v26 = vld [vmem:[#allocation5 + $0x68] sm:$0xff]  ;;  %v179_v27 = vld [vmem:[#allocation7 + $0x60] sm:$0xff]  ;;  %v69_v30 = vld [vmem:[#allocation5 + $0x58] sm:$0xff] }
  0x31   :  { %99 = vmatpush1.msra.mxu0 %v80_v10  ;;  %306 = vmatprep.subr.mxu1 %v196_v21  ;;  %v70_v28 = vld [vmem:[#allocation5 + $0x60] sm:$0xff]  ;;  %v178_v31 = vld [vmem:[#allocation7 + $0x58] sm:$0xff]  ;;  %v68_v32 = vld [vmem:[#allocation5 + $0x50] sm:$0xff] }
  0x32   :  { %100 = vmatprep.subr.mxu0 %v79_v11  ;;  %307 = vmatpush3.msra.mxu1 %v180_v23  ;;  %v193_v33 = vld [vmem:[#allocation7 + $0xd0] sm:$0xff]  ;;  %v67_v34 = vld [vmem:[#allocation5 + $0x48] sm:$0xff]  ;;  %v66_v36 = vld [vmem:[#allocation5 + $0x40] sm:$0xff] }
  0x33   :  { %101 = vmatpush1.msra.mxu0 %v78_v12  ;;  %308 = vmatprep.subr.mxu1 %v195_v25  ;;  %v177_v35 = vld [vmem:[#allocation7 + $0x50] sm:$0xff]  ;;  %v192_v37 = vld [vmem:[#allocation7 + $0xc8] sm:$0xff]  ;;  %v65_v38 = vld [vmem:[#allocation5 + $0x38] sm:$0xff] }
  0x34   :  { %102 = vmatprep.subr.mxu0 %v77_v13  ;;  %309 = vmatpush3.msra.mxu1 %v179_v27  ;;  %v176_v39 = vld [vmem:[#allocation7 + $0x48] sm:$0xff]  ;;  %v64_v40 = vld [vmem:[#allocation5 + $0x30] sm:$0xff]  ;;  %v191_v41 = vld [vmem:[#allocation7 + $0xc0] sm:$0xff] }
  0x35   :  { %103 = vmatpush1.msra.mxu0 %v76_v14  ;;  %310 = vmatprep.subr.mxu1 %v194_v29  ;;  %v63_v42 = vld [vmem:[#allocation5 + $0x28] sm:$0xff]  ;;  %v175_v43 = vld [vmem:[#allocation7 + $0x40] sm:$0xff]  ;;  %v190_v45 = vld [vmem:[#allocation7 + $0xb8] sm:$0xff] }
  0x36   :  { %104 = vmatprep.subr.mxu0 %v75_v18  ;;  %311 = vmatpush3.msra.mxu1 %v178_v31  ;;  %v62_v44 = vld [vmem:[#allocation5 + $0x20] sm:$0xff]  ;;  %v61_v46 = vld [vmem:[#allocation5 + $0x18] sm:$0xff]  ;;  %v60_v48 = vld [vmem:[#allocation5 + $0x10] sm:$0xff] }
  0x37   :  { %105 = vmatpush1.msra.mxu0 %v74_v20  ;;  %312 = vmatprep.subr.mxu1 %v193_v33  ;;  %v174_v47 = vld [vmem:[#allocation7 + $0x38] sm:$0xff]  ;;  %v189_v49 = vld [vmem:[#allocation7 + $0xb0] sm:$0xff]  ;;  %v59_v50 = vld [vmem:[#allocation5 + $0x8] sm:$0xff] }
  0x38   :  { %106 = vmatprep.subr.mxu0 %v73_v22  ;;  %313 = vmatpush3.msra.mxu1 %v177_v35  ;;  %v173_v51 = vld [vmem:[#allocation7 + $0x30] sm:$0xff]  ;;  %v58_v52 = vld [vmem:[#allocation5] sm:$0xff]  ;;  %v188_v53 = vld [vmem:[#allocation7 + $0xa8] sm:$0xff] }
  0x39   :  { %107 = vmatpush1.msra.mxu0 %v72_v24  ;;  %314 = vmatprep.subr.mxu1 %v192_v37  ;;  %v57_v54 = vld [vmem:[#allocation2] sm:$0xff]  ;;  %v172_v55 = vld [vmem:[#allocation7 + $0x28] sm:$0xff]  ;;  %v187_v56 = vld [vmem:[#allocation7 + $0xa0] sm:$0xff] }
  0x3a   :  { %108 = vmatprep.subr.mxu0 %v71_v26  ;;  %315 = vmatpush3.msra.mxu1 %v176_v39  ;;  %v171_v57 = vld [vmem:[#allocation7 + $0x20] sm:$0xff]  ;;  %v186_v58 = vld [vmem:[#allocation7 + $0x98] sm:$0xff]  ;;  %v185_v60 = vld [vmem:[#allocation7 + $0x90] sm:$0xff] }
  0x3b   :  { %109 = vmatpush1.msra.mxu0 %v70_v28  ;;  %316 = vmatprep.subr.mxu1 %v191_v41  ;;  %v170_v59 = vld [vmem:[#allocation7 + $0x18] sm:$0xff]  ;;  %v169_v61 = vld [vmem:[#allocation7 + $0x10] sm:$0xff]  ;;  %v184_v62 = vld [vmem:[#allocation7 + $0x88] sm:$0xff] }
  0x3c   :  { %110 = vmatprep.subr.mxu0 %v69_v30  ;;  %317 = vmatpush3.msra.mxu1 %v175_v43  ;;  %v168_v63 = vld [vmem:[#allocation7 + $0x8] sm:$0xff]  ;;  %v183_v0 = vld [vmem:[#allocation7 + $0x80] sm:$0xff] }
  0x3d   :  { %111 = vmatpush1.msra.mxu0 %v68_v32  ;;  %318 = vmatprep.subr.mxu1 %v190_v45  ;;  %v167_v1 = vld [vmem:[#allocation7] sm:$0xff] }
  0x3e   :  { %112 = vmatprep.subr.mxu0 %v67_v34  ;;  %319 = vmatpush3.msra.mxu1 %v174_v47 }
  0x3f   :  { %113 = vmatpush1.msra.mxu0 %v66_v36  ;;  %320 = vmatprep.subr.mxu1 %v189_v49 }
  0x40   :  { %114 = vmatprep.subr.mxu0 %v65_v38  ;;  %321 = vmatpush3.msra.mxu1 %v173_v51 }
  0x41   :  { %115 = vmatpush1.msra.mxu0 %v64_v40  ;;  %322 = vmatprep.subr.mxu1 %v188_v53 }
  0x42   :  { %116 = vmatprep.subr.mxu0 %v63_v42  ;;  %323 = vmatpush3.msra.mxu1 %v172_v55 }
  0x43   :  { %117 = vmatpush1.msra.mxu0 %v62_v44  ;;  %324 = vmatprep.subr.mxu1 %v187_v56 }
  0x44   :  { %118 = vmatprep.subr.mxu0 %v61_v46  ;;  %325 = vmatpush3.msra.mxu1 %v171_v57 }
  0x45   :  { %119 = vmatpush1.msra.mxu0 %v60_v48  ;;  %326 = vmatprep.subr.mxu1 %v186_v58 }
  0x46   :  { %120 = vmatprep.subr.mxu0 %v59_v50  ;;  %327 = vmatpush3.msra.mxu1 %v170_v59 }
  0x47   :  { %121 = vmatpush1.msra.mxu0 %v58_v52  ;;  %328 = vmatprep.subr.mxu1 %v185_v60 }
  0x48   :  { %155 = vmatmul.mubr.f32.vlgmr.msra.gmra.mxu0 %v57_v54  ;;  %329 = vmatpush3.msra.mxu1 %v169_v61 }
  0x49   :  { %330 = vmatprep.subr.mxu1 %v184_v62 }
  0x4a   :  { %331 = vmatpush3.msra.mxu1 %v168_v63 }
  0x4b   :  { %332 = vmatprep.subr.mxu1 %v183_v0 }
  0x4c   :  { %333 = vmatpush3.msra.mxu1 %v167_v1 }
 0x108   :  { %v156_v2 = vpop.f32.mrf.mxu0 }
 0x109   :  { %v161_v3 = vmul.f32 0.01, %v156_v2 }
 0x10a   :  { %v158_v4 = vpop.f32.mrf.mxu0 }
 0x10b   :  { %v163_v5 = vmax.f32 %v156_v2, %v161_v3  ;;  %v162_v6 = vmul.f32 0.01, %v158_v4 }
 0x10d   :  { %165 = vst [vmem:[#allocation8] sm:$0xff] %v163_v5  ;;  %v164_v7 = vmax.f32 %v158_v4, %v162_v6 }
 0x10f   :  { %166 = vst [vmem:[#allocation8 + $0x8] sm:$0xff] %v164_v7  ;;  %263 = vmatprep.mubr.f32.mxu1 %v164_v7 }
 0x110   :  { %264 = vmatmul.mubr.f32.vlgmr.msra.gmra.mxu1 %v163_v5 }
 0x111   :  { %418 = shalt.err (!%p415_p5)
}
 0x112   :  { %281 = dma.vmem_to_hbm [thread:$0]  %s279_s2, 256, %s508_s3, [#allocation4]  }
 0x113   :  { %s464_s10 = smov [#allocation9]  }
 0x114   :  { %s288_s11 = sshll.u32 %s464_s10, 4  ;;  %s289_s11 = int_to_ptr.vmem [resolvable:$true] %s288_s11 }
 0x115   :  { %s427_s12 = scalar_lea.vmem %s289_s11, 128  ;;  %p432_p7 = scmp.lt.s32.totalorder %s289_s11, %s289_s11 }
 0x116   :  { %p428_p6 = scmp.ne.s32.totalorder %s289_s11, %s427_s12  ;;  %p433_p8 = scmp.lt.s32.totalorder %s427_s12, %s427_s12 }
 0x118   :  { %p434_p9 = por %p433_p8, %p432_p7 }
 0x11a   :  { %p435_p10 = pnand %p434_p9, %p428_p6 }
 0x1d0   :  { %v334_v8 = vpop.f32.mrf.mxu1 }
 0x1d2   :  { %v335_v9 = vpop.f32.mrf.mxu1 }
 0x1d3   :  { %v336_v10 = vadd.f32 %v335_v9, %v334_v8 }
 0x1d5   :  { %v269_v11 = vmul.f32 0.01, %v336_v10 }
 0x1d7   :  { %v270_v12 = vmax.f32 %v336_v10, %v269_v11 }
 0x1d9   :  { %271 = vst [vmem:[#allocation9] sm:$0xff] %v270_v12 }
 0x1da   :  { %438 = shalt.err (!%p435_p10)
}
 0x1db   :  { %291 = dma.vmem_to_hbm [thread:$0]  %s289_s11, 128, %s509_s4, [#allocation10]  }
 0x1dc   :  { %451 = dma.done.wait [#allocation4], 256  }
 0x1dd   :  { %452 = vsyncadd [#allocation4], 4294967040 }
 0x1de   :  { %453 = dma.done.wait [#allocation10], 128  }
 0x1df   :  { %454 = vsyncadd [#allocation10], 4294967168 }
 0x1e0   :  { %298 = vsyncpa [#allocation3], 1 }
 0x1e1   :  { %299 = vsyncpa [#allocation6], 1 }
 0x1e2   :  { %300 = vsyncpa [#allocation4], 1 }
 0x1e3   :  { %301 = vsyncpa [#allocation10], 1 }

</bundles_post_ra>
